<compile_context>
chip_gen: v7x
topology: tpu7x:2x2x1
jax: 0.10.0
libtpu: 0.0.40
codegen_flags: <defaults>
</compile_context>

<pallas_src>
import functools

import jax
import jax.numpy as jnp
from jax.experimental import pallas as pl
from jax.experimental.pallas import tpu as pltpu


def mlp_kernel(x_ref, w1t_ref, b1_ref, w2t_ref, b2_ref, o_ref):
    # fc1: (TB, C) @ (C, 128) -> (TB, 128); Mosaic pads the small K internally.
    x = x_ref[...].astype(w1t_ref.dtype)
    h = jnp.dot(x, w1t_ref[...], preferred_element_type=jnp.float32)
    h = jnp.maximum(h + b1_ref[...], 0.0)              # bias + ReLU in f32 (VPU)
    # fc2: (TB, 128) @ (128, C) -> (TB, C); stored directly (narrow lanes are
    # store-slot slack in this DMA-bound kernel).
    y = jnp.dot(h.astype(w2t_ref.dtype), w2t_ref[...],
                preferred_element_type=jnp.float32)
    o_ref[...] = (y + b2_ref[...]).astype(o_ref.dtype)


def _round_up(a, m):
    return (a + m - 1) // m * m


def prepare_params(w1, b1, w2, b2, compute_dtype=jnp.float32):
    """One-time parameter prep (PyTorch nn.Linear layout -> matmul layout).

    w1: (128, n_classes), b1: (128,), w2: (n_classes, 128), b2: (n_classes,)
    Returns only arrays (safe to pass through jax.jit); shapes are re-derived
    from the arrays inside the wrapper.
    """
    hidden, n_classes = w1.shape
    return {
        "w1t": w1.T.astype(compute_dtype),                  # (n_classes, 128)
        "b1": b1.reshape(1, hidden).astype(jnp.float32),    # (1, 128)
        "w2t": w2.T.astype(compute_dtype),                  # (128, n_classes)
        "b2": b2.reshape(1, n_classes).astype(jnp.float32), # (1, n_classes)
    }


@functools.partial(jax.jit, static_argnames=("tb",))
def mlp_forward(x, params, *, tb=4096):
    """x: (B, n_classes).  Returns (B, n_classes) in x.dtype."""
    B, n_classes = x.shape
    w1t, b1, w2t, b2 = params["w1t"], params["b1"], params["w2t"], params["b2"]
    hidden = w1t.shape[1]           # static Python ints from array shapes

    # --- batch tiling (no feature padding; blocks span the full row width) ---
    # tb: multiple of 8 (f32 sublane), clamped to the batch.  A block equal to
    # the full batch dim is always legal even when B % 8 != 0.
    tb = max(8, min(_round_up(tb, 8), _round_up(B, 8)))
    if tb >= B:
        if B >= 2048:
            # v7x: ensure at least 2 grid steps so both TensorCores get work.
            tb = _round_up(pl.cdiv(B, 2), 8)
        else:
            tb = B
    grid = (pl.cdiv(B, tb),)        # ragged last block handled by Pallas

    # VMEM per step (f32, lanes padded to 128 in VMEM): 2 x-buf + 2 out-buf at
    # tb=4096 is ~8 MiB + tiny resident weights -> fits v5e's 16 MiB default
    # scoped limit as well as v6e/v7x.
    cost = pl.CostEstimate(
        flops=4 * B * n_classes * hidden,
        transcendentals=0,
        bytes_accessed=(x.size + B * n_classes) * 4
        + (w1t.size + w2t.size) * jnp.dtype(w1t.dtype).itemsize
        + (b1.size + b2.size) * 4,
    )

    out = pl.pallas_call(
        mlp_kernel,
        out_shape=jax.ShapeDtypeStruct((B, n_classes), x.dtype),
        grid=grid,
        in_specs=[
            pl.BlockSpec((tb, n_classes), lambda i: (i, 0)),      # x: streamed
            pl.BlockSpec((n_classes, hidden), lambda i: (0, 0)),  # w1t: resident
            pl.BlockSpec((1, hidden), lambda i: (0, 0)),          # b1:  resident
            pl.BlockSpec((hidden, n_classes), lambda i: (0, 0)),  # w2t: resident
            pl.BlockSpec((1, n_classes), lambda i: (0, 0)),       # b2:  resident
        ],
        out_specs=pl.BlockSpec((tb, n_classes), lambda i: (i, 0)),
        compiler_params=pltpu.CompilerParams(
            dimension_semantics=("parallel",),   # shard batch across v7x's 2 TCs
        ),
        cost_estimate=cost,
    )(x, w1t, b1, w2t, b2)
    return out


def init_params(key, n_classes, hidden=128, dtype=jnp.float32):
    """Deterministic init mirroring PyTorch nn.Linear defaults
    (U(-1/sqrt(fan_in), 1/sqrt(fan_in)))."""
    k1, k2, k3, k4 = jax.random.split(key, 4)
    bound1 = 1.0 / (n_classes ** 0.5)
    bound2 = 1.0 / (hidden ** 0.5)
    w1 = jax.random.uniform(k1, (hidden, n_classes), dtype, -bound1, bound1)
    b1 = jax.random.uniform(k2, (hidden,), dtype, -bound1, bound1)
    w2 = jax.random.uniform(k3, (n_classes, hidden), dtype, -bound2, bound2)
    b2 = jax.random.uniform(k4, (n_classes,), dtype, -bound2, bound2)
    return w1, b1, w2, b2


if __name__ == "__main__":
    n_classes = 10
    batch = 8

    key = jax.random.PRNGKey(0)
    kx, kp = jax.random.split(key)
    x = jax.random.normal(kx, (batch, n_classes), jnp.float32)
    w1, b1, w2, b2 = init_params(kp, n_classes)

    # Reference (same math as the PyTorch module).
    ref = jnp.maximum(x @ w1.T + b1, 0.0) @ w2.T + b2

    # f32 weights (exact path; v5e-safe).
    params_f32 = prepare_params(w1, b1, w2, b2, compute_dtype=jnp.float32)
    out_f32 = jax.block_until_ready(mlp_forward(x, params_f32))
    assert out_f32.shape == (batch, n_classes)
    assert jnp.allclose(out_f32, ref, atol=1e-5, rtol=1e-5)

    # bf16 weights for the MXU (v6e/v7x path); f32 accumulation & elementwise.
    # (Activations are also cast to bf16 for the MXU operands — intentional.)
    params_bf16 = prepare_params(w1, b1, w2, b2, compute_dtype=jnp.bfloat16)
    out_bf16 = jax.block_until_ready(mlp_forward(x, params_bf16))
    assert out_bf16.shape == (batch, n_classes)
    assert jnp.allclose(out_bf16, ref, atol=5e-2, rtol=5e-2)

    print("KERNEL_OK")
</pallas_src>

<mosaic_0001>
module attributes {stable_mosaic.version = 11 : i64} {
  func.func @mlp_kernel(%arg0: i32, %arg1: memref<8x10xf32, #tpu.memory_space<vmem>>, %arg2: memref<10x128xf32, #tpu.memory_space<vmem>>, %arg3: memref<1x128xf32, #tpu.memory_space<vmem>>, %arg4: memref<128x10xf32, #tpu.memory_space<vmem>>, %arg5: memref<1x10xf32, #tpu.memory_space<vmem>>, %arg6: memref<8x10xf32, #tpu.memory_space<vmem>>) attributes {dimension_semantics = [#tpu.dimension_semantics<parallel>], iteration_bounds = array<i64: 1>, scalar_prefetch = 0 : i64, scratch_operands = 0 : i64, tpu.core_type = #tpu.core_type<tc>, window_params = [{transform_indices = @transform_0, window_bounds = array<i64: 8, 10>}, {pipeline_mode = #tpu.pipeline_mode<synchronous>, transform_indices = @transform_1, window_bounds = array<i64: 10, 128>}, {pipeline_mode = #tpu.pipeline_mode<synchronous>, transform_indices = @transform_2, window_bounds = array<i64: 1, 128>}, {pipeline_mode = #tpu.pipeline_mode<synchronous>, transform_indices = @transform_3, window_bounds = array<i64: 128, 10>}, {pipeline_mode = #tpu.pipeline_mode<synchronous>, transform_indices = @transform_4, window_bounds = array<i64: 1, 10>}, {transform_indices = @transform_5, window_bounds = array<i64: 8, 10>}]} {
    %c0 = arith.constant 0 : index
    %c0_0 = arith.constant 0 : index
    %0 = vector.load %arg1[%c0, %c0_0] : memref<8x10xf32, #tpu.memory_space<vmem>>, vector<8x10xf32>
    %c0_1 = arith.constant 0 : index
    %c0_2 = arith.constant 0 : index
    %1 = vector.load %arg2[%c0_1, %c0_2] : memref<10x128xf32, #tpu.memory_space<vmem>>, vector<10x128xf32>
    %cst = arith.constant dense<0.000000e+00> : vector<8x128xf32>
    %2 = tpu.matmul %0, %1, %cst {dimension_numbers = #tpu.dot_dimension_numbers<[1], [0], [0], [1], [0, 0, 1, 1], [], []>} : vector<8x10xf32>, vector<10x128xf32>, vector<8x128xf32> -> vector<8x128xf32>
    %c0_3 = arith.constant 0 : index
    %c0_4 = arith.constant 0 : index
    %3 = vector.load %arg3[%c0_3, %c0_4] : memref<1x128xf32, #tpu.memory_space<vmem>>, vector<1x128xf32>
    %4 = vector.broadcast %3 : vector<1x128xf32> to vector<8x128xf32>
    %5 = arith.addf %2, %4 : vector<8x128xf32>
    %cst_5 = arith.constant 0.000000e+00 : f32
    %6 = vector.broadcast %cst_5 : f32 to vector<8x128xf32>
    %7 = arith.maximumf %5, %6 : vector<8x128xf32>
    %c0_6 = arith.constant 0 : index
    %c0_7 = arith.constant 0 : index
    %8 = vector.load %arg4[%c0_6, %c0_7] : memref<128x10xf32, #tpu.memory_space<vmem>>, vector<128x10xf32>
    %cst_8 = arith.constant dense<0.000000e+00> : vector<8x10xf32>
    %9 = tpu.matmul %7, %8, %cst_8 {dimension_numbers = #tpu.dot_dimension_numbers<[1], [0], [0], [1], [0, 0, 1, 1], [], []>} : vector<8x128xf32>, vector<128x10xf32>, vector<8x10xf32> -> vector<8x10xf32>
    %c0_9 = arith.constant 0 : index
    %c0_10 = arith.constant 0 : index
    %10 = vector.load %arg5[%c0_9, %c0_10] : memref<1x10xf32, #tpu.memory_space<vmem>>, vector<1x10xf32>
    %11 = vector.broadcast %10 : vector<1x10xf32> to vector<8x10xf32>
    %12 = arith.addf %9, %11 : vector<8x10xf32>
    %c0_11 = arith.constant 0 : index
    %c0_12 = arith.constant 0 : index
    %13 = vector.load %arg6[%c0_11, %c0_12] : memref<8x10xf32, #tpu.memory_space<vmem>>, vector<8x10xf32>
    tpu.vector_store %arg6[%c0_11, %c0_12], %12 {strides = array<i32>} : memref<8x10xf32, #tpu.memory_space<vmem>>, vector<8x10xf32>,
    return
  }
  func.func @transform_0(%arg0: i32) -> (i32, i32) {
    %c0_i32 = arith.constant 0 : i32
    %c0_i32_0 = arith.constant 0 : i32
    return %arg0, %c0_i32 : i32, i32
  }
  func.func @transform_1(%arg0: i32) -> (i32, i32) {
    %c0_i32 = arith.constant 0 : i32
    %c0_i32_0 = arith.constant 0 : i32
    %c0_i32_1 = arith.constant 0 : i32
    return %c0_i32, %c0_i32_0 : i32, i32
  }
  func.func @transform_2(%arg0: i32) -> (i32, i32) {
    %c0_i32 = arith.constant 0 : i32
    %c0_i32_0 = arith.constant 0 : i32
    %c0_i32_1 = arith.constant 0 : i32
    return %c0_i32, %c0_i32_0 : i32, i32
  }
  func.func @transform_3(%arg0: i32) -> (i32, i32) {
    %c0_i32 = arith.constant 0 : i32
    %c0_i32_0 = arith.constant 0 : i32
    %c0_i32_1 = arith.constant 0 : i32
    return %c0_i32, %c0_i32_0 : i32, i32
  }
  func.func @transform_4(%arg0: i32) -> (i32, i32) {
    %c0_i32 = arith.constant 0 : i32
    %c0_i32_0 = arith.constant 0 : i32
    %c0_i32_1 = arith.constant 0 : i32
    return %c0_i32, %c0_i32_0 : i32, i32
  }
  func.func @transform_5(%arg0: i32) -> (i32, i32) {
    %c0_i32 = arith.constant 0 : i32
    %c0_i32_0 = arith.constant 0 : i32
    return %arg0, %c0_i32 : i32, i32
  }
}

</mosaic_0001>

<bundles_post_ra>
// kernel: mlp_forward.1
= control target key start
LH: loop header
LB: loop body
LE: loop exit
PB: predicated region body
PF: predicated region fallthrough
CT: control target
= control target key end

     0   :  { %vm35_vm0 = vcmask 1041408   ;;  %v341_v2 = vmov 0.0|0.0   ;;  %vm342_vm1 = vmmov 1   ;;  %vm343_vm3 = vmmov 0   ;;  %s453_s0 = inlined_call_operand.vmem [shape: f32[8,10], index: 0, kind: input, shape index: {}]   ;;  %s454_s1 = inlined_call_operand.vmem [shape: f32[10,128], index: 1, kind: input, shape index: {}]   ;;  %s455_s2 = inlined_call_operand.vmem [shape: f32[1,128], index: 2, kind: input, shape index: {}]   ;;  %s456_s3 = inlined_call_operand.vmem [shape: f32[128,10], index: 3, kind: input, shape index: {}]   ;;  %s457_s4 = inlined_call_operand.vmem [shape: f32[1,10], index: 4, kind: input, shape index: {}]   ;;  %s458_s5 = inlined_call_operand.hbm [shape: f32[8,10], index: 5, kind: output, shape index: {}]  }
   0x1   :  { %v22_v0 = vld [vmem:[%s454_s1] sm:$0xff]  ;;  %v23_v1 = vld [vmem:[%s454_s1 + $0x8] sm:$0x3]  ;;  %284 = vmatprep.subr.bf16.mxu0 %v341_v2  ;;  %vm286_vm2 = vmpackc.low %vm35_vm0, %vm342_vm1  ;;  %288 = vmatprep.subr.bf16.mxu1 %v341_v2  ;;  %v344_v5 = vmov 0.0   ;;  %vm31_vm4 = vcmask 80896  }
   0x2   :  { %v285_v3 = vpack.c.bf16 %v23_v1, %v22_v0  ;;  %v110_v4 = vld [vmem:[%s456_s3] sm:$0xff]  ;;  %246 = vmatprep.mubr.msk.f32.mxu0 %vm343_vm3, %v344_v5  ;;  %v111_v6 = vld [vmem:[%s456_s3 + $0x8] sm:$0xff]  ;;  %v112_v7 = vld [vmem:[%s456_s3 + $0x10] sm:$0xff]  ;;  %281 = vmatprep.mubr.msk.f32.mxu1 %vm343_vm3, %v344_v5 }
   0x3   :  { %v113_v8 = vld [vmem:[%s456_s3 + $0x18] sm:$0xff]  ;;  %v21_v9 = vld [vmem:[%s453_s0] sm:$0xff]  ;;  %v289_v10 = vpack.c.bf16 %v111_v6, %v110_v4  ;;  %v115_v13 = vld [vmem:[%s456_s3 + $0x28] sm:$0xff] }
   0x4   :  { %287 = vmatpush3.bf16.msk.msra.mxu0 %vm286_vm2, %v285_v3  ;;  %v292_v11 = vpack.c.bf16 %v113_v8, %v112_v7  ;;  %v114_v12 = vld [vmem:[%s456_s3 + $0x20] sm:$0xff] }
   0x5   :  { %290 = vmatpush3.bf16.msra.mxu1 %v289_v10 }
   0x6   :  { %291 = vmatprep.subr.bf16.mxu1 %v341_v2 }
   0x7   :  { %247 = vmatmul.mubr.msk.f32.vlgmr.msra.gmra.mrb[0].mxu0 %vm31_vm4, %v21_v9 }
   0x8   :  { %10 = vsyncpa [#allocation3], 0  ;;  %v295_v14 = vpack.c.bf16 %v115_v13, %v114_v12  ;;  %v116_v15 = vld [vmem:[%s456_s3 + $0x30] sm:$0xff]  ;;  %v117_v16 = vld [vmem:[%s456_s3 + $0x38] sm:$0xff]  ;;  %s345_s7 = smov [#allocation2]  }
   0x9   :  { %293 = vmatpush3.bf16.msra.mxu1 %v292_v11  ;;  %v298_v17 = vpack.c.bf16 %v117_v16, %v116_v15  ;;  %v118_v18 = vld [vmem:[%s456_s3 + $0x40] sm:$0xff]  ;;  %v119_v19 = vld [vmem:[%s456_s3 + $0x48] sm:$0xff]  ;;  %v120_v21 = vld [vmem:[%s456_s3 + $0x50] sm:$0xff]  ;;  %s210_s8 = sshll.u32 %s345_s7, 4  ;;  %s211_s8 = int_to_ptr.vmem [resolvable:$true] %s210_s8 }
   0xa   :  { %294 = vmatprep.subr.bf16.mxu1 %v341_v2  ;;  %v301_v20 = vpack.c.bf16 %v119_v19, %v118_v18  ;;  %v121_v22 = vld [vmem:[%s456_s3 + $0x58] sm:$0xff]  ;;  %v122_v24 = vld [vmem:[%s456_s3 + $0x60] sm:$0xff]  ;;  %v123_v25 = vld [vmem:[%s456_s3 + $0x68] sm:$0xff]  ;;  %p322_p1 = scmp.lt.s32.totalorder %s211_s8, %s211_s8 }
   0xb   :  { %v304_v23 = vpack.c.bf16 %v121_v22, %v120_v21  ;;  %v307_v26 = vpack.c.bf16 %v123_v25, %v122_v24  ;;  %v124_v27 = vld [vmem:[%s456_s3 + $0x70] sm:$0xff]  ;;  %v125_v28 = vld [vmem:[%s456_s3 + $0x78] sm:$0xff]  ;;  %v218_v30 = vld [vmem:[%s455_s2] ss:$0 sm:$0xff]  ;;  %s317_s3 = scalar_lea.vmem %s211_s8, 128 }
   0xc   :  { %v310_v29 = vpack.c.bf16 %v125_v28, %v124_v27  ;;  %v221_v35 = vld [vmem:[%s457_s4] ss:$0 sm:$0xff]  ;;  %p318_p0 = scmp.ne.s32.totalorder %s211_s8, %s317_s3  ;;  %p323_p2 = scmp.lt.s32.totalorder %s317_s3, %s317_s3 }
   0xd   :  { %296 = vmatpush3.bf16.msra.mxu1 %v295_v14 }
   0xe   :  { %297 = vmatprep.subr.bf16.mxu1 %v341_v2  ;;  %p324_p3 = por %p323_p2, %p322_p1 }
  0x10   :  { %p325_p4 = pnand %p324_p3, %p318_p0 }
  0x11   :  { %299 = vmatpush3.bf16.msra.mxu1 %v298_v17 }
  0x12   :  { %300 = vmatprep.subr.bf16.mxu1 %v341_v2 }
  0x15   :  { %302 = vmatpush3.bf16.msra.mxu1 %v301_v20 }
  0x16   :  { %303 = vmatprep.subr.bf16.mxu1 %v341_v2 }
  0x19   :  { %305 = vmatpush3.bf16.msra.mxu1 %v304_v23 }
  0x1a   :  { %306 = vmatprep.subr.bf16.mxu1 %v341_v2 }
  0x1d   :  { %308 = vmatpush3.bf16.msra.mxu1 %v307_v26 }
  0x1e   :  { %309 = vmatprep.subr.bf16.mxu1 %v341_v2 }
  0x21   :  { %311 = vmatpush3.bf16.msra.mxu1 %v310_v29 }
  0xda   :  { %v105_v31 = vpop.f32.mrb[0].mxu0 }
  0xdb   :  { %v106_v32 = vadd.f32 %v218_v30, %v105_v31  ;;  %v248_v33 = vpop.f32.mrb[1].mxu0 }
  0xdd   :  { %v109_v34 = vmax.f32 %v106_v32, 0.0 }
  0xdf   :  { %282 = vmatmul.mubr.f32.vlgmr.msra.gmra.mrb[0].mxu1 %v109_v34 }
 0x1b2   :  { %v199_v36 = vpop.f32.mrb[0].mxu1 }
 0x1b3   :  { %v200_v37 = vadd.f32 %v221_v35, %v199_v36  ;;  %v283_v38 = vpop.f32.mrb[1].mxu1 }
 0x1b5   :  { %203 = vst.msk [vmem:[#allocation2] sm:$0xff] %vm31_vm4, %v200_v37 }
 0x1b6   :  { %328 = shalt.err (!%p325_p4)
}
 0x1b7   :  { %s329_s0 = scalar_lea.hbm %s458_s5, 128 }
 0x1b8   :  { %p330_p5 = scmp.ne.s32.totalorder %s458_s5, %s329_s0  ;;  %p333_p6 = scmp.lt.u32.totalorder %s329_s0, %s458_s5 }
 0x1ba   :  { %p335_p7 = pnand %p333_p6, %p330_p5 }
 0x1bc   :  { %338 = shalt.err (!%p335_p7)
}
 0x1bd   :  { %213 = dma.vmem_to_hbm [thread:$0]  %s211_s8, 128, %s458_s5, [#allocation3]  }
 0x1be   :  { %339 = dma.done.wait [#allocation3], 128  }
 0x1bf   :  { %340 = vsyncadd [#allocation3], 4294967168 }
 0x1c0   :  { %217 = vsyncpa [#allocation3], 1 }

</bundles_post_ra>
